<compile_context>
chip_gen: v7x
topology: tpu7x:2x2x1
jax: 0.10.0
libtpu: 0.0.40
codegen_flags: <defaults>
</compile_context>

<pallas_src>
import functools

import jax
import jax.numpy as jnp
from jax.experimental import pallas as pl
from jax.experimental.pallas import tpu as pltpu


def _dwconv3x3_bias_relu(x, w, b, ml, mr, mt, mb, *, W, L):
    """Depthwise 3x3 conv (zero padded) + bias + ReLU on a flattened (C, H*W) tile.

    x:  (C, L) f32, L = H*W, row-major pixels (lane axis)
    w:  (C, 9) f32 taps, row-major (di, dj)
    b:  (C, 1) f32 bias
    ml/mr/mt/mb: (1, L) f32 masks killing the column / row wraps of the rolls.
    """
    # Row shifts (wraps handled by mt / mb on the whole row-sum).
    xu = pltpu.roll(x, W % L, axis=1)          # value of pixel (h-1, w)
    xd = pltpu.roll(x, (L - W) % L, axis=1)    # value of pixel (h+1, w)

    def hrow(src, wl, wc, wr):
        left = pltpu.roll(src, 1 % L, axis=1)          # (., w-1); wraps at w == 0
        right = pltpu.roll(src, (L - 1) % L, axis=1)   # (., w+1); wraps at w == W-1
        # Reassociated masking: ml / mr applied once per stencil row.
        return ml * (wl * left) + wc * src + mr * (wr * right)

    top = hrow(xu, w[:, 0:1], w[:, 1:2], w[:, 2:3])
    mid = hrow(x, w[:, 3:4], w[:, 4:5], w[:, 5:6])
    bot = hrow(xd, w[:, 6:7], w[:, 7:8], w[:, 8:9])
    return jnp.maximum(mt * top + mid + mb * bot + b, 0.0)


def _fused_encoder_kernel(x_ref, w1_ref, b1_ref, w2_ref, b2_ref, o_ref, xe_ref,
                          *, H, W, cin, cout, mult, nb):
    """Fused (grouped conv 3x3 + bias + ReLU) x 2 for one batch block.

    x_ref:  (NB, Cin, L)   flattened NCHW input block, L = H*W
    w*_ref: (Cout, 9)      per-output-channel 3x3 taps, row-major (di, dj)
    b*_ref: (Cout, 1)      per-output-channel bias
    o_ref:  (NB, Cout, L)  flattened NCHW output block
    xe_ref: (Cout, L)      VMEM scratch for the groups=Cin channel expansion
    """
    f32 = jnp.float32
    L = H * W

    # Per-lane edge masks built in-kernel (no HBM inputs / DMAs for them).
    lane = jax.lax.broadcasted_iota(jnp.int32, (1, L), 1)
    if W & (W - 1) == 0:
        col = lane & (W - 1)
    else:
        col = lane % W
    ml = (col != 0).astype(f32)          # kills (., w-1) reads at w == 0
    mr = (col != W - 1).astype(f32)      # kills (., w+1) reads at w == W-1
    mt = (lane >= W).astype(f32)         # kills (h-1, .) reads at h == 0
    mb = (lane < L - W).astype(f32)      # kills (h+1, .) reads at h == H-1

    w1 = w1_ref[...].astype(f32)
    b1 = b1_ref[...].astype(f32)
    w2 = w2_ref[...].astype(f32)
    b2 = b2_ref[...].astype(f32)

    for bi in range(nb):                 # NB is small & static; amortizes grid overhead
        xin = x_ref[bi].astype(f32)      # (Cin, L)

        if mult == 1:
            xe = xin
        else:
            # groups=Cin expansion: out channel c reads in channel c // mult.
            # Cin lane-aligned multi-sublane block stores (no zero-fill, no halo).
            for g in range(cin):
                xe_ref[g * mult:(g + 1) * mult, :] = jnp.broadcast_to(
                    xin[g:g + 1, :], (mult, L))
            xe = xe_ref[...]

        # conv1 + bias + ReLU   (Dropout(0.2) is identity in eval mode)
        y = _dwconv3x3_bias_relu(xe, w1, b1, ml, mr, mt, mb, W=W, L=L)
        # conv2 (depthwise) + bias + ReLU — y never leaves registers/VMEM
        z = _dwconv3x3_bias_relu(y, w2, b2, ml, mr, mt, mb, W=W, L=L)

        o_ref[bi] = z.astype(o_ref.dtype)


def _pick_batch_block(N, Cout, L):
    """Largest batch block that divides N, fits a small VMEM budget, and keeps
    at least 2 grid steps when possible (v7x megacore has 2 TensorCores)."""
    per_b_bytes = 4 * Cout * L * 4           # rough live f32 working set / element
    budget = 4 * 1024 * 1024
    nb = max(1, min(N, budget // max(per_b_bytes, 1)))
    while nb > 1 and (N // nb) < 2:
        nb -= 1
    while N % nb:
        nb -= 1
    return nb


def encoder_block_forward(x_nchw, params, *, batch_block=None):
    """Forward pass of encoder_block (eval mode). x_nchw: (N, Cin, H, W)."""
    w1, b1, w2, b2 = params["w1"], params["b1"], params["w2"], params["b2"]
    N, Cin, H, W = x_nchw.shape
    Cout = w1.shape[0]
    if Cout % Cin != 0:
        raise ValueError(f"out_channels ({Cout}) must be a multiple of in_channels ({Cin})")
    mult = Cout // Cin
    L = H * W

    # Free (contiguous) reshape: NCHW -> (N, C, H*W); lane-dense kernel view.
    x_flat = x_nchw.reshape(N, Cin, L)

    # Tiny weight / bias prep.
    w1k = w1.reshape(Cout, 9).astype(jnp.float32)
    w2k = w2.reshape(Cout, 9).astype(jnp.float32)
    b1k = b1.reshape(Cout, 1).astype(jnp.float32)
    b2k = b2.reshape(Cout, 1).astype(jnp.float32)

    nb = batch_block if batch_block is not None else _pick_batch_block(N, Cout, L)
    grid = (N // nb,)

    kernel = functools.partial(_fused_encoder_kernel, H=H, W=W, cin=Cin,
                               cout=Cout, mult=mult, nb=nb)

    itemsize = jnp.dtype(x_nchw.dtype).itemsize
    flops = 2 * 2 * 9 * N * Cout * L                       # mul+add per tap, 2 convs
    bytes_accessed = itemsize * N * (Cin + Cout) * L + 4 * 2 * Cout * 10

    out_flat = pl.pallas_call(
        kernel,
        out_shape=jax.ShapeDtypeStruct((N, Cout, L), x_nchw.dtype),
        grid=grid,
        in_specs=[
            pl.BlockSpec((nb, Cin, L), lambda n: (n, 0, 0)),
            pl.BlockSpec((Cout, 9), lambda n: (0, 0)),
            pl.BlockSpec((Cout, 1), lambda n: (0, 0)),
            pl.BlockSpec((Cout, 9), lambda n: (0, 0)),
            pl.BlockSpec((Cout, 1), lambda n: (0, 0)),
        ],
        out_specs=pl.BlockSpec((nb, Cout, L), lambda n: (n, 0, 0)),
        scratch_shapes=[pltpu.VMEM((Cout, L), jnp.float32)],   # channel-expansion buffer
        compiler_params=pltpu.CompilerParams(
            dimension_semantics=("parallel",)),
        cost_estimate=pl.CostEstimate(flops=flops, transcendentals=0,
                                      bytes_accessed=bytes_accessed),
    )(x_flat, w1k, b1k, w2k, b2k)

    # Free (contiguous) reshape back to NCHW.
    return out_flat.reshape(N, Cout, H, W)


def _reference_forward(x_nchw, params):
    """Pure-JAX reference using lax.conv_general_dilated with feature groups."""
    w1, b1, w2, b2 = params["w1"], params["b1"], params["w2"], params["b2"]
    Cin = x_nchw.shape[1]
    Cout = w1.shape[0]

    def gconv(x, w, b, groups):
        y = jax.lax.conv_general_dilated(
            x, w, window_strides=(1, 1), padding=((1, 1), (1, 1)),
            dimension_numbers=("NCHW", "OIHW", "NCHW"),
            feature_group_count=groups)
        return jnp.maximum(y + b[None, :, None, None], 0.0)

    y = gconv(x_nchw, w1, b1, Cin)
    y = gconv(y, w2, b2, Cout)
    return y


if __name__ == "__main__":
    # Small shapes consistent with the module: Cout must be a multiple of Cin.
    N, Cin, Cout, H, W = 2, 4, 8, 16, 16

    key = jax.random.PRNGKey(0)
    k1, k2, k3, k4, k5 = jax.random.split(key, 5)

    # Conv2d weight shapes: (out_channels, in_channels/groups=1, 3, 3)
    params = {
        "w1": jax.random.normal(k1, (Cout, 1, 3, 3), jnp.float32) * 0.1,
        "b1": jax.random.normal(k2, (Cout,), jnp.float32) * 0.1,
        "w2": jax.random.normal(k3, (Cout, 1, 3, 3), jnp.float32) * 0.1,
        "b2": jax.random.normal(k4, (Cout,), jnp.float32) * 0.1,
    }
    x = jax.random.normal(k5, (N, Cin, H, W), jnp.float32)

    fwd = jax.jit(encoder_block_forward)
    out = jax.block_until_ready(fwd(x, params))

    ref = jax.block_until_ready(_reference_forward(x, params))
    assert out.shape == (N, Cout, H, W), out.shape
    assert jnp.allclose(out, ref, atol=1e-5, rtol=1e-5), \
        float(jnp.max(jnp.abs(out - ref)))

    print("KERNEL_OK")
</pallas_src>

<mosaic_0001>
module attributes {stable_mosaic.version = 11 : i64} {
  func.func @_fused_encoder_kernel(%arg0: i32, %arg1: memref<1x4x256xf32, #tpu.memory_space<vmem>>, %arg2: memref<8x9xf32, #tpu.memory_space<vmem>>, %arg3: memref<8x1xf32, #tpu.memory_space<vmem>>, %arg4: memref<8x9xf32, #tpu.memory_space<vmem>>, %arg5: memref<8x1xf32, #tpu.memory_space<vmem>>, %arg6: memref<1x8x256xf32, #tpu.memory_space<vmem>>, %arg7: memref<8x256xf32, #tpu.memory_space<vmem>>) attributes {dimension_semantics = [#tpu.dimension_semantics<parallel>], iteration_bounds = array<i64: 2>, scalar_prefetch = 0 : i64, scratch_operands = 1 : i64, tpu.core_type = #tpu.core_type<tc>, window_params = [{transform_indices = @transform_0, window_bounds = array<i64: 1, 4, 256>}, {pipeline_mode = #tpu.pipeline_mode<synchronous>, transform_indices = @transform_1, window_bounds = array<i64: 8, 9>}, {pipeline_mode = #tpu.pipeline_mode<synchronous>, transform_indices = @transform_2, window_bounds = array<i64: 8, 1>}, {pipeline_mode = #tpu.pipeline_mode<synchronous>, transform_indices = @transform_3, window_bounds = array<i64: 8, 9>}, {pipeline_mode = #tpu.pipeline_mode<synchronous>, transform_indices = @transform_4, window_bounds = array<i64: 8, 1>}, {transform_indices = @transform_5, window_bounds = array<i64: 1, 8, 256>}]} {
    %0 = tpu.iota {dimensions = array<i32: 1>} : vector<1x256xi32>
    %c15_i32 = arith.constant 15 : i32
    %1 = vector.broadcast %c15_i32 : i32 to vector<1x256xi32>
    %2 = arith.andi %0, %1 : vector<1x256xi32>
    %c0_i32 = arith.constant 0 : i32
    %3 = vector.broadcast %c0_i32 : i32 to vector<1x256xi32>
    %4 = arith.cmpi ne, %2, %3 : vector<1x256xi32>
    %5 = arith.extui %4 : vector<1x256xi1> to vector<1x256xi32>
    %6 = arith.sitofp %5 : vector<1x256xi32> to vector<1x256xf32>
    %c15_i32_0 = arith.constant 15 : i32
    %7 = vector.broadcast %c15_i32_0 : i32 to vector<1x256xi32>
    %8 = arith.cmpi ne, %2, %7 : vector<1x256xi32>
    %9 = arith.extui %8 : vector<1x256xi1> to vector<1x256xi32>
    %10 = arith.sitofp %9 : vector<1x256xi32> to vector<1x256xf32>
    %c16_i32 = arith.constant 16 : i32
    %11 = vector.broadcast %c16_i32 : i32 to vector<1x256xi32>
    %12 = arith.cmpi sge, %0, %11 : vector<1x256xi32>
    %13 = arith.extui %12 : vector<1x256xi1> to vector<1x256xi32>
    %14 = arith.sitofp %13 : vector<1x256xi32> to vector<1x256xf32>
    %c240_i32 = arith.constant 240 : i32
    %15 = vector.broadcast %c240_i32 : i32 to vector<1x256xi32>
    %16 = arith.cmpi slt, %0, %15 : vector<1x256xi32>
    %17 = arith.extui %16 : vector<1x256xi1> to vector<1x256xi32>
    %18 = arith.sitofp %17 : vector<1x256xi32> to vector<1x256xf32>
    %c0 = arith.constant 0 : index
    %c0_1 = arith.constant 0 : index
    %19 = vector.load %arg2[%c0, %c0_1] : memref<8x9xf32, #tpu.memory_space<vmem>>, vector<8x9xf32>
    %c0_2 = arith.constant 0 : index
    %c0_3 = arith.constant 0 : index
    %20 = vector.load %arg3[%c0_2, %c0_3] : memref<8x1xf32, #tpu.memory_space<vmem>>, vector<8x1xf32>
    %c0_4 = arith.constant 0 : index
    %c0_5 = arith.constant 0 : index
    %21 = vector.load %arg4[%c0_4, %c0_5] : memref<8x9xf32, #tpu.memory_space<vmem>>, vector<8x9xf32>
    %c0_6 = arith.constant 0 : index
    %c0_7 = arith.constant 0 : index
    %22 = vector.load %arg5[%c0_6, %c0_7] : memref<8x1xf32, #tpu.memory_space<vmem>>, vector<8x1xf32>
    %c0_8 = arith.constant 0 : index
    %c0_9 = arith.constant 0 : index
    %c0_10 = arith.constant 0 : index
    %23 = vector.load %arg1[%c0_8, %c0_9, %c0_10] : memref<1x4x256xf32, #tpu.memory_space<vmem>>, vector<1x4x256xf32>
    %24 = vector.shape_cast %23 : vector<1x4x256xf32> to vector<4x256xf32>
    %25 = vector.extract_strided_slice %24 {offsets = [0, 0], sizes = [1, 256], strides = [1, 1]} : vector<4x256xf32> to vector<1x256xf32>
    %26 = vector.shape_cast %25 : vector<1x256xf32> to vector<1x256xf32>
    %27 = vector.broadcast %26 : vector<1x256xf32> to vector<2x256xf32>
    %c0_11 = arith.constant 0 : index
    %c0_12 = arith.constant 0 : index
    %28 = vector.load %arg7[%c0_11, %c0_12] : memref<8x256xf32, #tpu.memory_space<vmem>>, vector<2x256xf32>
    tpu.vector_store %arg7[%c0_11, %c0_12], %27 {strides = array<i32>} : memref<8x256xf32, #tpu.memory_space<vmem>>, vector<2x256xf32>,
    %29 = vector.extract_strided_slice %24 {offsets = [1, 0], sizes = [1, 256], strides = [1, 1]} : vector<4x256xf32> to vector<1x256xf32>
    %30 = vector.shape_cast %29 : vector<1x256xf32> to vector<1x256xf32>
    %31 = vector.broadcast %30 : vector<1x256xf32> to vector<2x256xf32>
    %c2 = arith.constant 2 : index
    %c0_13 = arith.constant 0 : index
    %32 = vector.load %arg7[%c2, %c0_13] : memref<8x256xf32, #tpu.memory_space<vmem>>, vector<2x256xf32>
    tpu.vector_store %arg7[%c2, %c0_13], %31 {strides = array<i32>} : memref<8x256xf32, #tpu.memory_space<vmem>>, vector<2x256xf32>,
    %33 = vector.extract_strided_slice %24 {offsets = [2, 0], sizes = [1, 256], strides = [1, 1]} : vector<4x256xf32> to vector<1x256xf32>
    %34 = vector.shape_cast %33 : vector<1x256xf32> to vector<1x256xf32>
    %35 = vector.broadcast %34 : vector<1x256xf32> to vector<2x256xf32>
    %c4 = arith.constant 4 : index
    %c0_14 = arith.constant 0 : index
    %36 = vector.load %arg7[%c4, %c0_14] : memref<8x256xf32, #tpu.memory_space<vmem>>, vector<2x256xf32>
    tpu.vector_store %arg7[%c4, %c0_14], %35 {strides = array<i32>} : memref<8x256xf32, #tpu.memory_space<vmem>>, vector<2x256xf32>,
    %37 = vector.extract_strided_slice %24 {offsets = [3, 0], sizes = [1, 256], strides = [1, 1]} : vector<4x256xf32> to vector<1x256xf32>
    %38 = vector.shape_cast %37 : vector<1x256xf32> to vector<1x256xf32>
    %39 = vector.broadcast %38 : vector<1x256xf32> to vector<2x256xf32>
    %c6 = arith.constant 6 : index
    %c0_15 = arith.constant 0 : index
    %40 = vector.load %arg7[%c6, %c0_15] : memref<8x256xf32, #tpu.memory_space<vmem>>, vector<2x256xf32>
    tpu.vector_store %arg7[%c6, %c0_15], %39 {strides = array<i32>} : memref<8x256xf32, #tpu.memory_space<vmem>>, vector<2x256xf32>,
    %c0_16 = arith.constant 0 : index
    %c0_17 = arith.constant 0 : index
    %41 = vector.load %arg7[%c0_16, %c0_17] : memref<8x256xf32, #tpu.memory_space<vmem>>, vector<8x256xf32>
    %c16_i32_18 = arith.constant 16 : i32
    %42 = tpu.dynamic_rotate %41 by %c16_i32_18 dim 1 : vector<8x256xf32>, i32 -> vector<8x256xf32>
    %c240_i32_19 = arith.constant 240 : i32
    %43 = tpu.dynamic_rotate %41 by %c240_i32_19 dim 1 : vector<8x256xf32>, i32 -> vector<8x256xf32>
    %44 = vector.extract_strided_slice %19 {offsets = [0, 0], sizes = [8, 1], strides = [1, 1]} : vector<8x9xf32> to vector<8x1xf32>
    %45 = vector.extract_strided_slice %19 {offsets = [0, 1], sizes = [8, 1], strides = [1, 1]} : vector<8x9xf32> to vector<8x1xf32>
    %46 = vector.extract_strided_slice %19 {offsets = [0, 2], sizes = [8, 1], strides = [1, 1]} : vector<8x9xf32> to vector<8x1xf32>
    %c1_i32 = arith.constant 1 : i32
    %47 = tpu.dynamic_rotate %42 by %c1_i32 dim 1 : vector<8x256xf32>, i32 -> vector<8x256xf32>
    %c255_i32 = arith.constant 255 : i32
    %48 = tpu.dynamic_rotate %42 by %c255_i32 dim 1 : vector<8x256xf32>, i32 -> vector<8x256xf32>
    %49 = vector.broadcast %44 : vector<8x1xf32> to vector<8x256xf32>
    %50 = arith.mulf %49, %47 : vector<8x256xf32>
    %51 = vector.broadcast %6 : vector<1x256xf32> to vector<8x256xf32>
    %52 = arith.mulf %51, %50 : vector<8x256xf32>
    %53 = vector.broadcast %45 : vector<8x1xf32> to vector<8x256xf32>
    %54 = arith.mulf %53, %42 : vector<8x256xf32>
    %55 = arith.addf %52, %54 : vector<8x256xf32>
    %56 = vector.broadcast %46 : vector<8x1xf32> to vector<8x256xf32>
    %57 = arith.mulf %56, %48 : vector<8x256xf32>
    %58 = vector.broadcast %10 : vector<1x256xf32> to vector<8x256xf32>
    %59 = arith.mulf %58, %57 : vector<8x256xf32>
    %60 = arith.addf %55, %59 : vector<8x256xf32>
    %61 = vector.extract_strided_slice %19 {offsets = [0, 3], sizes = [8, 1], strides = [1, 1]} : vector<8x9xf32> to vector<8x1xf32>
    %62 = vector.extract_strided_slice %19 {offsets = [0, 4], sizes = [8, 1], strides = [1, 1]} : vector<8x9xf32> to vector<8x1xf32>
    %63 = vector.extract_strided_slice %19 {offsets = [0, 5], sizes = [8, 1], strides = [1, 1]} : vector<8x9xf32> to vector<8x1xf32>
    %c1_i32_20 = arith.constant 1 : i32
    %64 = tpu.dynamic_rotate %41 by %c1_i32_20 dim 1 : vector<8x256xf32>, i32 -> vector<8x256xf32>
    %c255_i32_21 = arith.constant 255 : i32
    %65 = tpu.dynamic_rotate %41 by %c255_i32_21 dim 1 : vector<8x256xf32>, i32 -> vector<8x256xf32>
    %66 = vector.broadcast %61 : vector<8x1xf32> to vector<8x256xf32>
    %67 = arith.mulf %66, %64 : vector<8x256xf32>
    %68 = vector.broadcast %6 : vector<1x256xf32> to vector<8x256xf32>
    %69 = arith.mulf %68, %67 : vector<8x256xf32>
    %70 = vector.broadcast %62 : vector<8x1xf32> to vector<8x256xf32>
    %71 = arith.mulf %70, %41 : vector<8x256xf32>
    %72 = arith.addf %69, %71 : vector<8x256xf32>
    %73 = vector.broadcast %63 : vector<8x1xf32> to vector<8x256xf32>
    %74 = arith.mulf %73, %65 : vector<8x256xf32>
    %75 = vector.broadcast %10 : vector<1x256xf32> to vector<8x256xf32>
    %76 = arith.mulf %75, %74 : vector<8x256xf32>
    %77 = arith.addf %72, %76 : vector<8x256xf32>
    %78 = vector.extract_strided_slice %19 {offsets = [0, 6], sizes = [8, 1], strides = [1, 1]} : vector<8x9xf32> to vector<8x1xf32>
    %79 = vector.extract_strided_slice %19 {offsets = [0, 7], sizes = [8, 1], strides = [1, 1]} : vector<8x9xf32> to vector<8x1xf32>
    %80 = vector.extract_strided_slice %19 {offsets = [0, 8], sizes = [8, 1], strides = [1, 1]} : vector<8x9xf32> to vector<8x1xf32>
    %c1_i32_22 = arith.constant 1 : i32
    %81 = tpu.dynamic_rotate %43 by %c1_i32_22 dim 1 : vector<8x256xf32>, i32 -> vector<8x256xf32>
    %c255_i32_23 = arith.constant 255 : i32
    %82 = tpu.dynamic_rotate %43 by %c255_i32_23 dim 1 : vector<8x256xf32>, i32 -> vector<8x256xf32>
    %83 = vector.broadcast %78 : vector<8x1xf32> to vector<8x256xf32>
    %84 = arith.mulf %83, %81 : vector<8x256xf32>
    %85 = vector.broadcast %6 : vector<1x256xf32> to vector<8x256xf32>
    %86 = arith.mulf %85, %84 : vector<8x256xf32>
    %87 = vector.broadcast %79 : vector<8x1xf32> to vector<8x256xf32>
    %88 = arith.mulf %87, %43 : vector<8x256xf32>
    %89 = arith.addf %86, %88 : vector<8x256xf32>
    %90 = vector.broadcast %80 : vector<8x1xf32> to vector<8x256xf32>
    %91 = arith.mulf %90, %82 : vector<8x256xf32>
    %92 = vector.broadcast %10 : vector<1x256xf32> to vector<8x256xf32>
    %93 = arith.mulf %92, %91 : vector<8x256xf32>
    %94 = arith.addf %89, %93 : vector<8x256xf32>
    %95 = vector.broadcast %14 : vector<1x256xf32> to vector<8x256xf32>
    %96 = arith.mulf %95, %60 : vector<8x256xf32>
    %97 = arith.addf %96, %77 : vector<8x256xf32>
    %98 = vector.broadcast %18 : vector<1x256xf32> to vector<8x256xf32>
    %99 = arith.mulf %98, %94 : vector<8x256xf32>
    %100 = arith.addf %97, %99 : vector<8x256xf32>
    %101 = vector.broadcast %20 : vector<8x1xf32> to vector<8x256xf32>
    %102 = arith.addf %100, %101 : vector<8x256xf32>
    %cst = arith.constant 0.000000e+00 : f32
    %103 = vector.broadcast %cst : f32 to vector<8x256xf32>
    %104 = arith.maximumf %102, %103 : vector<8x256xf32>
    %c16_i32_24 = arith.constant 16 : i32
    %105 = tpu.dynamic_rotate %104 by %c16_i32_24 dim 1 : vector<8x256xf32>, i32 -> vector<8x256xf32>
    %c240_i32_25 = arith.constant 240 : i32
    %106 = tpu.dynamic_rotate %104 by %c240_i32_25 dim 1 : vector<8x256xf32>, i32 -> vector<8x256xf32>
    %107 = vector.extract_strided_slice %21 {offsets = [0, 0], sizes = [8, 1], strides = [1, 1]} : vector<8x9xf32> to vector<8x1xf32>
    %108 = vector.extract_strided_slice %21 {offsets = [0, 1], sizes = [8, 1], strides = [1, 1]} : vector<8x9xf32> to vector<8x1xf32>
    %109 = vector.extract_strided_slice %21 {offsets = [0, 2], sizes = [8, 1], strides = [1, 1]} : vector<8x9xf32> to vector<8x1xf32>
    %c1_i32_26 = arith.constant 1 : i32
    %110 = tpu.dynamic_rotate %105 by %c1_i32_26 dim 1 : vector<8x256xf32>, i32 -> vector<8x256xf32>
    %c255_i32_27 = arith.constant 255 : i32
    %111 = tpu.dynamic_rotate %105 by %c255_i32_27 dim 1 : vector<8x256xf32>, i32 -> vector<8x256xf32>
    %112 = vector.broadcast %107 : vector<8x1xf32> to vector<8x256xf32>
    %113 = arith.mulf %112, %110 : vector<8x256xf32>
    %114 = vector.broadcast %6 : vector<1x256xf32> to vector<8x256xf32>
    %115 = arith.mulf %114, %113 : vector<8x256xf32>
    %116 = vector.broadcast %108 : vector<8x1xf32> to vector<8x256xf32>
    %117 = arith.mulf %116, %105 : vector<8x256xf32>
    %118 = arith.addf %115, %117 : vector<8x256xf32>
    %119 = vector.broadcast %109 : vector<8x1xf32> to vector<8x256xf32>
    %120 = arith.mulf %119, %111 : vector<8x256xf32>
    %121 = vector.broadcast %10 : vector<1x256xf32> to vector<8x256xf32>
    %122 = arith.mulf %121, %120 : vector<8x256xf32>
    %123 = arith.addf %118, %122 : vector<8x256xf32>
    %124 = vector.extract_strided_slice %21 {offsets = [0, 3], sizes = [8, 1], strides = [1, 1]} : vector<8x9xf32> to vector<8x1xf32>
    %125 = vector.extract_strided_slice %21 {offsets = [0, 4], sizes = [8, 1], strides = [1, 1]} : vector<8x9xf32> to vector<8x1xf32>
    %126 = vector.extract_strided_slice %21 {offsets = [0, 5], sizes = [8, 1], strides = [1, 1]} : vector<8x9xf32> to vector<8x1xf32>
    %c1_i32_28 = arith.constant 1 : i32
    %127 = tpu.dynamic_rotate %104 by %c1_i32_28 dim 1 : vector<8x256xf32>, i32 -> vector<8x256xf32>
    %c255_i32_29 = arith.constant 255 : i32
    %128 = tpu.dynamic_rotate %104 by %c255_i32_29 dim 1 : vector<8x256xf32>, i32 -> vector<8x256xf32>
    %129 = vector.broadcast %124 : vector<8x1xf32> to vector<8x256xf32>
    %130 = arith.mulf %129, %127 : vector<8x256xf32>
    %131 = vector.broadcast %6 : vector<1x256xf32> to vector<8x256xf32>
    %132 = arith.mulf %131, %130 : vector<8x256xf32>
    %133 = vector.broadcast %125 : vector<8x1xf32> to vector<8x256xf32>
    %134 = arith.mulf %133, %104 : vector<8x256xf32>
    %135 = arith.addf %132, %134 : vector<8x256xf32>
    %136 = vector.broadcast %126 : vector<8x1xf32> to vector<8x256xf32>
    %137 = arith.mulf %136, %128 : vector<8x256xf32>
    %138 = vector.broadcast %10 : vector<1x256xf32> to vector<8x256xf32>
    %139 = arith.mulf %138, %137 : vector<8x256xf32>
    %140 = arith.addf %135, %139 : vector<8x256xf32>
    %141 = vector.extract_strided_slice %21 {offsets = [0, 6], sizes = [8, 1], strides = [1, 1]} : vector<8x9xf32> to vector<8x1xf32>
    %142 = vector.extract_strided_slice %21 {offsets = [0, 7], sizes = [8, 1], strides = [1, 1]} : vector<8x9xf32> to vector<8x1xf32>
    %143 = vector.extract_strided_slice %21 {offsets = [0, 8], sizes = [8, 1], strides = [1, 1]} : vector<8x9xf32> to vector<8x1xf32>
    %c1_i32_30 = arith.constant 1 : i32
    %144 = tpu.dynamic_rotate %106 by %c1_i32_30 dim 1 : vector<8x256xf32>, i32 -> vector<8x256xf32>
    %c255_i32_31 = arith.constant 255 : i32
    %145 = tpu.dynamic_rotate %106 by %c255_i32_31 dim 1 : vector<8x256xf32>, i32 -> vector<8x256xf32>
    %146 = vector.broadcast %141 : vector<8x1xf32> to vector<8x256xf32>
    %147 = arith.mulf %146, %144 : vector<8x256xf32>
    %148 = vector.broadcast %6 : vector<1x256xf32> to vector<8x256xf32>
    %149 = arith.mulf %148, %147 : vector<8x256xf32>
    %150 = vector.broadcast %142 : vector<8x1xf32> to vector<8x256xf32>
    %151 = arith.mulf %150, %106 : vector<8x256xf32>
    %152 = arith.addf %149, %151 : vector<8x256xf32>
    %153 = vector.broadcast %143 : vector<8x1xf32> to vector<8x256xf32>
    %154 = arith.mulf %153, %145 : vector<8x256xf32>
    %155 = vector.broadcast %10 : vector<1x256xf32> to vector<8x256xf32>
    %156 = arith.mulf %155, %154 : vector<8x256xf32>
    %157 = arith.addf %152, %156 : vector<8x256xf32>
    %158 = vector.broadcast %14 : vector<1x256xf32> to vector<8x256xf32>
    %159 = arith.mulf %158, %123 : vector<8x256xf32>
    %160 = arith.addf %159, %140 : vector<8x256xf32>
    %161 = vector.broadcast %18 : vector<1x256xf32> to vector<8x256xf32>
    %162 = arith.mulf %161, %157 : vector<8x256xf32>
    %163 = arith.addf %160, %162 : vector<8x256xf32>
    %164 = vector.broadcast %22 : vector<8x1xf32> to vector<8x256xf32>
    %165 = arith.addf %163, %164 : vector<8x256xf32>
    %cst_32 = arith.constant 0.000000e+00 : f32
    %166 = vector.broadcast %cst_32 : f32 to vector<8x256xf32>
    %167 = arith.maximumf %165, %166 : vector<8x256xf32>
    %c0_33 = arith.constant 0 : index
    %c0_34 = arith.constant 0 : index
    %c0_35 = arith.constant 0 : index
    %168 = vector.load %arg6[%c0_33, %c0_34, %c0_35] : memref<1x8x256xf32, #tpu.memory_space<vmem>>, vector<1x8x256xf32>
    %169 = vector.shape_cast %168 : vector<1x8x256xf32> to vector<8x256xf32>
    %170 = vector.shape_cast %167 : vector<8x256xf32> to vector<1x8x256xf32>
    tpu.vector_store %arg6[%c0_33, %c0_34, %c0_35], %170 {strides = array<i32>} : memref<1x8x256xf32, #tpu.memory_space<vmem>>, vector<1x8x256xf32>,
    return
  }
  func.func @transform_0(%arg0: i32) -> (i32, i32, i32) {
    %c0_i32 = arith.constant 0 : i32
    %c0_i32_0 = arith.constant 0 : i32
    %c0_i32_1 = arith.constant 0 : i32
    return %arg0, %c0_i32, %c0_i32_0 : i32, i32, i32
  }
  func.func @transform_1(%arg0: i32) -> (i32, i32) {
    %c0_i32 = arith.constant 0 : i32
    %c0_i32_0 = arith.constant 0 : i32
    %c0_i32_1 = arith.constant 0 : i32
    return %c0_i32, %c0_i32_0 : i32, i32
  }
  func.func @transform_2(%arg0: i32) -> (i32, i32) {
    %c0_i32 = arith.constant 0 : i32
    %c0_i32_0 = arith.constant 0 : i32
    %c0_i32_1 = arith.constant 0 : i32
    return %c0_i32, %c0_i32_0 : i32, i32
  }
  func.func @transform_3(%arg0: i32) -> (i32, i32) {
    %c0_i32 = arith.constant 0 : i32
    %c0_i32_0 = arith.constant 0 : i32
    %c0_i32_1 = arith.constant 0 : i32
    return %c0_i32, %c0_i32_0 : i32, i32
  }
  func.func @transform_4(%arg0: i32) -> (i32, i32) {
    %c0_i32 = arith.constant 0 : i32
    %c0_i32_0 = arith.constant 0 : i32
    %c0_i32_1 = arith.constant 0 : i32
    return %c0_i32, %c0_i32_0 : i32, i32
  }
  func.func @transform_5(%arg0: i32) -> (i32, i32, i32) {
    %c0_i32 = arith.constant 0 : i32
    %c0_i32_0 = arith.constant 0 : i32
    %c0_i32_1 = arith.constant 0 : i32
    return %arg0, %c0_i32, %c0_i32_0 : i32, i32, i32
  }
}

</mosaic_0001>

<bundles_post_ra>
// kernel: encoder_block_forward.1
= control target key start
LH: loop header
LB: loop body
LE: loop exit
PB: predicated region body
PF: predicated region fallthrough
CT: control target
= control target key end

     0   :  { %s802_s18 = smov 0   ;;  %s1063_s0 = inlined_call_operand.vmem [shape: f32[2,4,256], index: 0, kind: input, shape index: {}]   ;;  %s1064_s1 = inlined_call_operand.vmem [shape: f32[8,9], index: 1, kind: input, shape index: {}]   ;;  %s1065_s2 = inlined_call_operand.vmem [shape: f32[8,1], index: 2, kind: input, shape index: {}]   ;;  %s1066_s3 = inlined_call_operand.vmem [shape: f32[8,9], index: 3, kind: input, shape index: {}]   ;;  %s1067_s4 = inlined_call_operand.vmem [shape: f32[8,1], index: 4, kind: input, shape index: {}]   ;;  %s1068_s5 = inlined_call_operand.vmem [shape: f32[2,8,256], index: 5, kind: output, shape index: {}]  }
   0x1 LB: > { %s691_s19 = sadd.s32 4294967295, %s756_s18   ;;  %p695_p0 = scmp.ge.s32.totalorder %s756_s18, 1  ;;  %s756_s18 = sphi %s802_s18, %s15_s18  }
   0x2   : > { %p187_p1 = scmp.lt.s32.totalorder %s756_s18, 3 }
   0x4   : > { %p188_p2 = pnand %p695_p0, %p187_p1 }
   0x5   : > { %p215_p3 = scmp.lt.s32.totalorder (!%p188_p2), %s691_s19, 1  ;;  %v225_v0 = vlaneseq (!%p188_p2)  ;;  %v758_v1 = vmov (!%p188_p2), 1   ;;  %v759_v3 = vmov (!%p188_p2), 3   ;;  %s760_s24 = smov (!%p188_p2), 112   ;;  %v254_v31 = vld [vmem:[%s1064_s1] sm:$0xff] (!%p188_p2)  ;;  %v762_v32 = vmov (!%p188_p2), 2  }
   0x6   : > { %191 = sbr.rel (%p188_p2) target bundleno = 565 (0x235), region = 40  ;;  %732 = vset.pattern.permute.xlu1 (!%p188_p2), %v758_v1  ;;  %734 = vset.pattern.permute.xlu0 (!%p188_p2), %v759_v3  ;;  %s761_s25 = smov (!%p188_p2), 16   ;;  %v763_v33 = vmov (!%p188_p2), 5   ;;  %v764_v34 = vmov (!%p188_p2), 6   ;;  %v765_v35 = vmov (!%p188_p2), 0   ;;  %v766_v36 = vmov (!%p188_p2), 4  }
   0x7   : > { %v261_v2 = vshrl.u32 (!%p188_p2), %v225_v0, 7  ;;  %s767_s28 = smov (!%p188_p2), 1   ;;  %s768_s29 = smov (!%p188_p2), 127   ;;  %v769_v37 = vmov (!%p188_p2), 7   ;;  %v770_v38 = vmov (!%p188_p2), 8   ;;  %v850_v39 = vand.u32 (!%p188_p2), 127, %v225_v0 }
   0x8   : > { %v255_v48 = vld [vmem:[%s1065_s2] sm:$0xff] (!%p188_p2) }
   0x9   : > { %v262_v4 = vsub.s32 (!%p188_p2), 0, %v261_v2  ;;  %v282_v5 = vsub.s32 (!%p188_p2), 1, %v261_v2  ;;  %v302_v6 = vsub.s32 (!%p188_p2), 2, %v261_v2  ;;  %v322_v7 = vsub.s32 (!%p188_p2), 3, %v261_v2 }
   0xa   : > { %v266_v8 = vsub.s32 (!%p188_p2), 4, %v261_v2  ;;  %v286_v9 = vsub.s32 (!%p188_p2), 5, %v261_v2  ;;  %v306_v10 = vsub.s32 (!%p188_p2), 6, %v261_v2  ;;  %v326_v11 = vsub.s32 (!%p188_p2), 7, %v261_v2 }
   0xb   : > { %vm346_vm0 = vcmp.lt.s32.totalorder (!%p188_p2), %v850_v39, 16  ;;  %vm353_vm1 = vcmp.lt.s32.totalorder (!%p188_p2), %v850_v39, 112  ;;  %v894_v60 = vadd.s32 (!%p188_p2), 128, %v850_v39  ;;  %v228_v61 = vand.u32 (!%p188_p2), 15, %v850_v39 }
   0xc   : > { %vm360_vm2 = vcmp.lt.s32.totalorder (!%p188_p2), %v850_v39, 1  ;;  %vm367_vm7 = vcmp.lt.s32.totalorder (!%p188_p2), %v850_v39, 127  ;;  %vm242_vm8 = vcmp.ge.s32.totalorder (!%p188_p2), %v850_v39, 16 }
   0xd   : > { %s1070_s19 = smov (!%p215_p3, %s691_s19), 1  ;;  %v229_v62 = vand.u32 15, %v894_v60  ;;  %vm230_vm3 = vcmp.ne.s32.totalorder %v228_v61, 0  ;;  %vm236_vm5 = vcmp.ne.s32.totalorder %v228_v61, 15  ;;  %vm249_vm9 = vcmp.lt.s32.totalorder %v894_v60, 240  ;;  %v256_v60 = vld [vmem:[%s1066_s3] sm:$0xff] }
   0xe   : > { %s708_s20 = sshll.u32 %s1070_s19, 3  ;;  %s709_s11 = sshll.u32 %s1070_s19, 4 }
   0xf   : > { %s219_s23 = scalar_lea.vmem %s1063_s0, %s708_s20  ;;  %vm231_vm4 = vcmp.ne.s32.totalorder %v229_v62, 0  ;;  %vm237_vm6 = vcmp.ne.s32.totalorder %v229_v62, 15  ;;  %s224_s14 = scalar_lea.vmem %s1068_s5, %s709_s11 }
  0x10   : > { %v258_v12 = vld [vmem:[%s219_s23] sm:$0xff] }
  0x11   : > { %v263_v13 = vrot.slane %v258_v12, %v262_v4  ;;  %v283_v14 = vrot.slane %v258_v12, %v282_v5  ;;  %v303_v15 = vrot.slane %v258_v12, %v302_v6  ;;  %v323_v16 = vrot.slane %v258_v12, %v322_v7 }
  0x12   : > { %v267_v17 = vrot.slane %v258_v12, %v266_v8  ;;  %v287_v18 = vrot.slane %v258_v12, %v286_v9  ;;  %v307_v19 = vrot.slane %v258_v12, %v306_v10  ;;  %v327_v20 = vrot.slane %v258_v12, %v326_v11 }
  0x13   : > { %v273_v21 = vrot.slane %v263_v13, %v262_v4  ;;  %v293_v22 = vrot.slane %v283_v14, %v282_v5  ;;  %v313_v23 = vrot.slane %v303_v15, %v302_v6  ;;  %v333_v24 = vrot.slane %v323_v16, %v322_v7 }
  0x14   : > { %v277_v25 = vrot.slane %v267_v17, %v262_v4  ;;  %v297_v26 = vrot.slane %v287_v18, %v282_v5  ;;  %v317_v27 = vrot.slane %v307_v19, %v302_v6  ;;  %v337_v28 = vrot.slane %v327_v20, %v322_v7 }
  0x15   : > { %278 = vst [vmem:[#allocation2] sm:$0x3] %v273_v21  ;;  %298 = vst [vmem:[#allocation2] sm:$0xc] %v293_v22  ;;  %v771_v9 = vmov 0.0  }
  0x16   : > { %318 = vst [vmem:[#allocation2] sm:$0x30] %v313_v23  ;;  %338 = vst [vmem:[#allocation2] sm:$0xc0] %v333_v24  ;;  %v908_v10 = vsel %vm230_vm3, 1.0, %v771_v9  ;;  %v910_v11 = vsel %vm231_vm4, 1.0, %v771_v9 }
  0x17   : > { %279 = vst [vmem:[#allocation2 + $0x8] sm:$0x3] %v277_v25  ;;  %299 = vst [vmem:[#allocation2 + $0x8] sm:$0xc] %v297_v26  ;;  %v913_v13 = vsel %vm236_vm5, 1.0, %v771_v9  ;;  %v915_v14 = vsel %vm237_vm6, 1.0, %v771_v9 }
  0x18   : > { %319 = vst [vmem:[#allocation2 + $0x8] sm:$0x30] %v317_v27  ;;  %339 = vst [vmem:[#allocation2 + $0x8] sm:$0xc0] %v337_v28  ;;  %v926_v26 = vsel %vm242_vm8, 1.0, %v771_v9 }
  0x1d   : > { %v819_v29 = vld [vmem:[#allocation2] sm:$0xff] }
  0x1e   : > { %349 = vrot.lane.b32.xlu1 %v819_v29, %s760_s24  ;;  %342 = vrot.lane.b32.xlu0 %v819_v29, %s761_s25 }
  0x1f   : > { %v825_v30 = vld [vmem:[#allocation2 + $0x8] sm:$0xff] }
  0x22   : > { %351 = vrot.lane.b32.xlu1 %v825_v30, %s760_s24  ;;  %344 = vrot.lane.b32.xlu0 %v825_v30, %s761_s25 }
  0x26   : > { %380 = vperm.xlu1 %732, %v254_v31   ;;  %410 = vperm.xlu0 %734, %v254_v31  }
  0x2a   : > { %733 = vset.pattern.permute.xlu1 %v762_v32  ;;  %737 = vset.pattern.permute.xlu0 %v763_v33 }
  0x2b   : > { %388 = vperm.xlu1 %733, %v254_v31   ;;  %426 = vperm.xlu0 %737, %v254_v31  }
  0x2f   : > { %735 = vset.pattern.permute.xlu1 %v764_v34  ;;  %738 = vset.pattern.permute.xlu0 %v765_v35 }
  0x30   : > { %448 = vperm.xlu1 %735, %v254_v31   ;;  %372 = vperm.xlu0 %738, %v254_v31  }
  0x34   : > { %736 = vset.pattern.permute.xlu1 %v766_v36  ;;  %397 = vrot.lane.b32.xlu0 %v819_v29, %s767_s28 }
  0x35   : > { %418 = vperm.xlu1 %736, %v254_v31  }
  0x38   : > { %403 = vrot.lane.b32.xlu0 %v819_v29, %s768_s29 }
  0x39   : > { %739 = vset.pattern.permute.xlu1 %v769_v37 }
  0x3a   : > { %456 = vperm.xlu1 %739, %v254_v31  }
  0x3e   : > { %740 = vset.pattern.permute.xlu1 %v770_v38 }
  0x3f   : > { %464 = vperm.xlu1 %740, %v254_v31  }
  0x43   : > { %399 = vrot.lane.b32.xlu1 %v825_v30, %s767_s28 }
  0x44   : > { %741 = vset.pattern.permute.xlu1 %v758_v1 }
  0x47   : > { %405 = vrot.lane.b32.xlu1 %v825_v30, %s768_s29 }
  0x90   : > { %v343_v40 = vpop.permute.xlu0 %342  ;;  %v350_v41 = vpop.permute.xlu1 %349 }
  0x94   : > { %v345_v42 = vpop.permute.xlu0 %344  ;;  %v352_v45 = vpop.permute.xlu1 %351 }
  0x95   : > { %v348_v43 = vsel %vm346_vm0, %v345_v42, %v343_v40  ;;  %v857_v44 = vsel %vm346_vm0, %v343_v40, %v345_v42  ;;  %v868_v46 = vsel %vm353_vm1, %v350_v41, %v352_v45  ;;  %v872_v47 = vsel %vm353_vm1, %v352_v45, %v350_v41 }
  0x96   : > { %356 = vrot.lane.b32.xlu0 %v348_v43, %s767_s28  ;;  %358 = vrot.lane.b32.xlu1 %v857_v44, %s767_s28 }
  0x9a   : > { %363 = vrot.lane.b32.xlu0 %v348_v43, %s768_s29  ;;  %365 = vrot.lane.b32.xlu1 %v857_v44, %s768_s29 }
  0x9e   : > { %435 = vrot.lane.b32.xlu0 %v868_v46, %s767_s28  ;;  %437 = vrot.lane.b32.xlu1 %v872_v47, %s767_s28 }
  0xa2   : > { %441 = vrot.lane.b32.xlu0 %v868_v46, %s768_s29  ;;  %443 = vrot.lane.b32.xlu1 %v872_v47, %s768_s29 }
  0xa5   : > { %v885_v49 = vpop.permute.xlu1 %380  ;;  %v411_v52 = vpop.permute.xlu0 %410 }
  0xa6   : > { %483 = vperm.xlu0 %738, %v255_v48   ;;  %v383_v23 = vmul.f32 %v885_v49, %v348_v43 }
  0xaa   : > { %742 = vset.pattern.permute.xlu0 %v762_v32  ;;  %v389_v50 = vpop.permute.xlu1 %388  ;;  %v427_v54 = vpop.permute.xlu0 %426 }
  0xaf   : > { %v887_v51 = vpop.permute.xlu1 %448  ;;  %v373_v57 = vpop.permute.xlu0 %372 }
  0xb3   : > { %v398_v59 = vpop.permute.xlu0 %397 }
  0xb4   : > { %v419_v53 = vpop.permute.xlu1 %418 }
  0xb5   : > { %v421_v24 = vmul.f32 %v419_v53, %v819_v29  ;;  %v422_v40 = vmul.f32 %v419_v53, %v825_v30 }
  0xb7   : > { %v404_v0 = vpop.permute.xlu0 %403 }
  0xb9   : > { %v889_v55 = vpop.permute.xlu1 %456 }
  0xbe   : > { %v891_v56 = vpop.permute.xlu1 %464 }
  0xc2   : > { %v400_v58 = vpop.permute.xlu1 %399 }
  0xc3   : > { %v402_v1 = vsel %vm360_vm2, %v400_v58, %v398_v59  ;;  %v401_v6 = vsel %vm360_vm2, %v398_v59, %v400_v58  ;;  %v384_v59 = vmul.f32 %v885_v49, %v857_v44 }
  0xc4   : > { %v413_v12 = vmul.f32 %v411_v52, %v402_v1  ;;  %v414_v19 = vmul.f32 %v411_v52, %v401_v6  ;;  %v460_v1 = vmul.f32 %v889_v55, %v872_v47 }
  0xc6   : > { %v406_v63 = vpop.permute.xlu1 %405  ;;  %v415_v27 = vmul.f32 %v908_v10, %v413_v12  ;;  %v416_v29 = vmul.f32 %v910_v11, %v414_v19  ;;  %v964_v19 = vsel %vm249_vm9, 1.0, %v771_v9  ;;  %v257_v9 = vld [vmem:[%s1067_s4] sm:$0xff] }
  0xc7   : > { %v407_v15 = vsel %vm367_vm7, %v404_v0, %v406_v63  ;;  %v408_v28 = vsel %vm367_vm7, %v406_v63, %v404_v0  ;;  %v459_v0 = vmul.f32 %v889_v55, %v868_v46 }
  0xc8   : > { %v429_v31 = vmul.f32 %v427_v54, %v407_v15  ;;  %v423_v61 = vadd.f32 %v421_v24, %v415_v27 }
  0xca   : > { %v431_v62 = vmul.f32 %v913_v13, %v429_v31 }
 0x108   : > { %v359_v2 = vpop.permute.xlu1 %358  ;;  %v357_v4 = vpop.permute.xlu0 %356 }
 0x109   : > { %v362_v5 = vsel %vm360_vm2, %v359_v2, %v357_v4  ;;  %v361_v7 = vsel %vm360_vm2, %v357_v4, %v359_v2 }
 0x10a   : > { %v375_v8 = vmul.f32 %v373_v57, %v362_v5  ;;  %v376_v20 = vmul.f32 %v373_v57, %v361_v7  ;;  %v424_v5 = vadd.f32 %v422_v40, %v416_v29 }
 0x10c   : > { %v377_v16 = vmul.f32 %v908_v10, %v375_v8  ;;  %v366_v17 = vpop.permute.xlu1 %365  ;;  %v364_v18 = vpop.permute.xlu0 %363  ;;  %v378_v43 = vmul.f32 %v910_v11, %v376_v20  ;;  %v433_v8 = vadd.f32 %v431_v62, %v423_v61 }
 0x10d   : > { %v368_v21 = vsel %vm367_vm7, %v364_v18, %v366_v17  ;;  %v369_v22 = vsel %vm367_vm7, %v366_v17, %v364_v18 }
 0x10e   : > { %v391_v25 = vmul.f32 %v389_v50, %v368_v21  ;;  %v392_v32 = vmul.f32 %v389_v50, %v369_v22  ;;  %v385_v41 = vadd.f32 %v383_v23, %v377_v16  ;;  %v430_v50 = vmul.f32 %v427_v54, %v408_v28 }
 0x10f   : > { %v386_v6 = vadd.f32 %v384_v59, %v378_v43 }
 0x110   : > { %v393_v42 = vmul.f32 %v913_v13, %v391_v25  ;;  %v438_v45 = vpop.permute.xlu1 %437  ;;  %v436_v48 = vpop.permute.xlu0 %435  ;;  %v394_v63 = vmul.f32 %v915_v14, %v392_v32  ;;  %v432_v7 = vmul.f32 %v915_v14, %v430_v50 }
 0x111   : > { %v439_v52 = vsel %vm360_vm2, %v436_v48, %v438_v45  ;;  %v440_v57 = vsel %vm360_vm2, %v438_v45, %v436_v48 }
 0x112   : > { %v395_v58 = vadd.f32 %v393_v42, %v385_v41  ;;  %v451_v30 = vmul.f32 %v887_v51, %v440_v57  ;;  %v452_v53 = vmul.f32 %v887_v51, %v439_v52  ;;  %v396_v12 = vadd.f32 %v394_v63, %v386_v6 }
 0x113   : > { %v434_v20 = vadd.f32 %v432_v7, %v424_v5 }
 0x114   : > { %v453_v54 = vmul.f32 %v908_v10, %v451_v30  ;;  %v454_v2 = vmul.f32 %v910_v11, %v452_v53  ;;  %v444_v4 = vpop.permute.xlu1 %443  ;;  %v442_v51 = vpop.permute.xlu0 %441  ;;  %v473_v55 = vmul.f32 %v926_v26, %v395_v58 }
 0x115   : > { %v445_v44 = vsel %vm367_vm7, %v442_v51, %v444_v4  ;;  %v446_v49 = vsel %vm367_vm7, %v444_v4, %v442_v51  ;;  %v476_v24 = vadd.f32 %v434_v20, %v396_v12 }
 0x116   : > { %v467_v46 = vmul.f32 %v891_v56, %v445_v44  ;;  %v468_v47 = vmul.f32 %v891_v56, %v446_v49  ;;  %v461_v15 = vadd.f32 %v459_v0, %v453_v54  ;;  %v462_v16 = vadd.f32 %v460_v1, %v454_v2 }
 0x117   : > { %v475_v23 = vadd.f32 %v473_v55, %v433_v8 }
 0x118   : > { %v469_v17 = vmul.f32 %v913_v13, %v467_v46  ;;  %v470_v18 = vmul.f32 %v915_v14, %v468_v47 }
 0x11a   : > { %v472_v21 = vadd.f32 %v470_v18, %v462_v16  ;;  %v471_v22 = vadd.f32 %v469_v17, %v461_v15 }
 0x11c   : > { %v478_v56 = vmul.f32 %v964_v19, %v472_v21  ;;  %v479_v25 = vadd.f32 %v475_v23, %v471_v22 }
 0x11e   : > { %v480_v27 = vadd.f32 %v478_v56, %v476_v24 }
 0x125   : > { %v484_v28 = vpop.permute.xlu0 %483 }
 0x126   : > { %v486_v31 = vadd.f32 %v484_v28, %v479_v25  ;;  %v487_v32 = vadd.f32 %v484_v28, %v480_v27 }
 0x128   : > { %v967_v40 = vmax.f32 %v486_v31, 0.0  ;;  %v969_v41 = vmax.f32 %v487_v32, 0.0 }
 0x12a   : > { %492 = vrot.lane.b32.xlu1 %v969_v41, %s761_s25  ;;  %496 = vrot.lane.b32.xlu0 %v967_v40, %s760_s24 }
 0x12e   : > { %532 = vperm.xlu0 %742, %v256_v60   ;;  %490 = vrot.lane.b32.xlu1 %v967_v40, %s761_s25 }
 0x132   : > { %745 = vset.pattern.permute.xlu0 %v766_v36  ;;  %498 = vrot.lane.b32.xlu1 %v969_v41, %s760_s24 }
 0x133   : > { %562 = vperm.xlu0 %745, %v256_v60  }
 0x136   : > { %524 = vperm.xlu1 %741, %v256_v60  }
 0x137   : > { %748 = vset.pattern.permute.xlu0 %v770_v38 }
 0x138   : > { %608 = vperm.xlu0 %748, %v256_v60  }
 0x13a   : > { %743 = vset.pattern.permute.xlu1 %v759_v3 }
 0x13b   : > { %554 = vperm.xlu1 %743, %v256_v60  }
 0x13c   : > { %749 = vset.pattern.permute.xlu0 %v765_v35 }
 0x13d   : > { %516 = vperm.xlu0 %749, %v256_v60  }
 0x13f   : > { %744 = vset.pattern.permute.xlu1 %v764_v34 }
 0x140   : > { %592 = vperm.xlu1 %744, %v256_v60  }
 0x141   : > { %541 = vrot.lane.b32.xlu0 %v967_v40, %s767_s28 }
 0x144   : > { %746 = vset.pattern.permute.xlu1 %v763_v33 }
 0x145   : > { %547 = vrot.lane.b32.xlu0 %v967_v40, %s768_s29  ;;  %570 = vperm.xlu1 %746, %v256_v60  }
 0x149   : > { %747 = vset.pattern.permute.xlu1 %v769_v37 }
 0x14a   : > { %600 = vperm.xlu1 %747, %v256_v60  }
 0x14e   : > { %543 = vrot.lane.b32.xlu1 %v969_v41, %s767_s28 }
 0x152   : > { %549 = vrot.lane.b32.xlu1 %v969_v41, %s768_s29 }
 0x19c   : > { %v493_v3 = vpop.permute.xlu1 %492  ;;  %v497_v33 = vpop.permute.xlu0 %496 }
 0x1a0   : > { %v491_v34 = vpop.permute.xlu1 %490 }
 0x1a1   : > { %v495_v35 = vsel %vm346_vm0, %v493_v3, %v491_v34  ;;  %v494_v37 = vsel %vm346_vm0, %v491_v34, %v493_v3 }
 0x1a2   : > { %508 = vrot.lane.b32.xlu0 %v495_v35, %s768_s29  ;;  %502 = vrot.lane.b32.xlu1 %v495_v35, %s767_s28 }
 0x1a4   : > { %v499_v36 = vpop.permute.xlu1 %498 }
 0x1a5   : > { %v500_v38 = vsel %vm353_vm1, %v497_v33, %v499_v36  ;;  %v501_v42 = vsel %vm353_vm1, %v499_v36, %v497_v33 }
 0x1a6   : > { %504 = vrot.lane.b32.xlu1 %v494_v37, %s767_s28  ;;  %579 = vrot.lane.b32.xlu0 %v500_v38, %s767_s28 }
 0x1aa   : > { %510 = vrot.lane.b32.xlu1 %v494_v37, %s768_s29  ;;  %585 = vrot.lane.b32.xlu0 %v500_v38, %s768_s29 }
 0x1ad   : > { %v533_v29 = vpop.permute.xlu0 %532 }
 0x1ae   : > { %581 = vrot.lane.b32.xlu1 %v501_v42, %s767_s28  ;;  %627 = vperm.xlu0 %749, %v257_v9  }
 0x1b2   : > { %587 = vrot.lane.b32.xlu1 %v501_v42, %s768_s29  ;;  %v563_v52 = vpop.permute.xlu0 %562 }
 0x1b3   : > { %v565_v21 = vmul.f32 %v563_v52, %v967_v40  ;;  %v566_v22 = vmul.f32 %v563_v52, %v969_v41 }
 0x1b5   : > { %v525_v45 = vpop.permute.xlu1 %524 }
 0x1b6   : > { %v527_v8 = vmul.f32 %v525_v45, %v495_v35  ;;  %v528_v34 = vmul.f32 %v525_v45, %v494_v37 }
 0x1b7   : > { %v609_v50 = vpop.permute.xlu0 %608 }
 0x1ba   : > { %v555_v48 = vpop.permute.xlu1 %554 }
 0x1bc   : > { %v517_v30 = vpop.permute.xlu0 %516 }
 0x1bf   : > { %v593_v43 = vpop.permute.xlu1 %592 }
 0x1c0   : > { %v542_v59 = vpop.permute.xlu0 %541 }
 0x1c4   : > { %v571_v57 = vpop.permute.xlu1 %570  ;;  %v548_v62 = vpop.permute.xlu0 %547 }
 0x1c9   : > { %v601_v58 = vpop.permute.xlu1 %600 }
 0x1ca   : > { %v603_v36 = vmul.f32 %v601_v58, %v500_v38  ;;  %v604_v9 = vmul.f32 %v601_v58, %v501_v42 }
 0x1cd   : > { %v544_v53 = vpop.permute.xlu1 %543 }
 0x1ce   : > { %v546_v2 = vsel %vm360_vm2, %v544_v53, %v542_v59  ;;  %v545_v5 = vsel %vm360_vm2, %v542_v59, %v544_v53 }
 0x1cf   : > { %v557_v7 = vmul.f32 %v555_v48, %v546_v2  ;;  %v558_v16 = vmul.f32 %v555_v48, %v545_v5 }
 0x1d1   : > { %v550_v61 = vpop.permute.xlu1 %549  ;;  %v559_v25 = vmul.f32 %v908_v10, %v557_v7  ;;  %v560_v41 = vmul.f32 %v910_v11, %v558_v16 }
 0x1d2   : > { %v551_v6 = vsel %vm367_vm7, %v548_v62, %v550_v61  ;;  %v552_v17 = vsel %vm367_vm7, %v550_v61, %v548_v62 }
 0x1d3   : > { %v573_v18 = vmul.f32 %v571_v57, %v551_v6  ;;  %v574_v32 = vmul.f32 %v571_v57, %v552_v17  ;;  %v567_v53 = vadd.f32 %v565_v21, %v559_v25  ;;  %v568_v58 = vadd.f32 %v566_v22, %v560_v41 }
 0x1d5   : > { %v575_v35 = vmul.f32 %v913_v13, %v573_v18  ;;  %v576_v45 = vmul.f32 %v915_v14, %v574_v32 }
 0x1d7   : > { %v577_v61 = vadd.f32 %v575_v35, %v567_v53 }
 0x214   : > { %v503_v63 = vpop.permute.xlu1 %502  ;;  %v509_v0 = vpop.permute.xlu0 %508 }
 0x218   : > { %v505_v1 = vpop.permute.xlu1 %504  ;;  %v580_v12 = vpop.permute.xlu0 %579 }
 0x219   : > { %v507_v54 = vsel %vm360_vm2, %v505_v1, %v503_v63  ;;  %v506_v4 = vsel %vm360_vm2, %v503_v63, %v505_v1  ;;  %v578_v1 = vadd.f32 %v576_v45, %v568_v58 }
 0x21a   : > { %v519_v51 = vmul.f32 %v517_v30, %v507_v54  ;;  %v520_v46 = vmul.f32 %v517_v30, %v506_v4 }
 0x21c   : > { %v521_v44 = vmul.f32 %v908_v10, %v519_v51  ;;  %v511_v49 = vpop.permute.xlu1 %510  ;;  %v522_v27 = vmul.f32 %v910_v11, %v520_v46  ;;  %v586_v48 = vpop.permute.xlu0 %585 }
 0x21d   : > { %v512_v47 = vsel %vm367_vm7, %v509_v0, %v511_v49  ;;  %v513_v55 = vsel %vm367_vm7, %v511_v49, %v509_v0 }
 0x21e   : > { %v535_v15 = vmul.f32 %v533_v29, %v512_v47  ;;  %v536_v20 = vmul.f32 %v533_v29, %v513_v55  ;;  %v529_v23 = vadd.f32 %v527_v8, %v521_v44  ;;  %v530_v57 = vadd.f32 %v528_v34, %v522_v27 }
 0x220   : > { %v537_v24 = vmul.f32 %v913_v13, %v535_v15  ;;  %v582_v56 = vpop.permute.xlu1 %581  ;;  %v538_v33 = vmul.f32 %v915_v14, %v536_v20 }
 0x221   : > { %v583_v28 = vsel %vm360_vm2, %v580_v12, %v582_v56  ;;  %v584_v31 = vsel %vm360_vm2, %v582_v56, %v580_v12 }
 0x222   : > { %v539_v60 = vadd.f32 %v537_v24, %v529_v23  ;;  %v595_v3 = vmul.f32 %v593_v43, %v584_v31  ;;  %v596_v40 = vmul.f32 %v593_v43, %v583_v28 }
 0x224   : > { %v597_v29 = vmul.f32 %v908_v10, %v595_v3  ;;  %v598_v52 = vmul.f32 %v910_v11, %v596_v40  ;;  %v588_v30 = vpop.permute.xlu1 %587  ;;  %v617_v42 = vmul.f32 %v926_v26, %v539_v60  ;;  %v540_v10 = vadd.f32 %v538_v33, %v530_v57 }
 0x225   : > { %v589_v43 = vsel %vm367_vm7, %v586_v48, %v588_v30  ;;  %v590_v37 = vsel %vm367_vm7, %v588_v30, %v586_v48 }
 0x226   : > { %v611_v59 = vmul.f32 %v609_v50, %v589_v43  ;;  %v612_v38 = vmul.f32 %v609_v50, %v590_v37  ;;  %v606_v11 = vadd.f32 %v604_v9, %v598_v52  ;;  %v605_v0 = vadd.f32 %v603_v36, %v597_v29 }
 0x227   : > { %v619_v2 = vadd.f32 %v617_v42, %v577_v61  ;;  %v620_v4 = vadd.f32 %v578_v1, %v540_v10 }
 0x228   : > { %v613_v62 = vmul.f32 %v913_v13, %v611_v59  ;;  %v614_v63 = vmul.f32 %v915_v14, %v612_v38 }
 0x22a   : > { %v615_v54 = vadd.f32 %v613_v62, %v605_v0  ;;  %v616_v39 = vadd.f32 %v614_v63, %v606_v11 }
 0x22c   : > { %v622_v51 = vmul.f32 %v964_v19, %v616_v39  ;;  %v623_v50 = vadd.f32 %v619_v2, %v615_v54 }
 0x22d   : > { %v628_v5 = vpop.permute.xlu0 %627 }
 0x22e   : > { %v624_v26 = vadd.f32 %v622_v51, %v620_v4  ;;  %v630_v6 = vadd.f32 %v628_v5, %v623_v50 }
 0x230   : > { %v631_v13 = vadd.f32 %v628_v5, %v624_v26  ;;  %v632_v44 = vmax.f32 %v630_v6, 0.0 }
 0x232   : > { %v633_v14 = vmax.f32 %v631_v13, 0.0  ;;  %634 = vst [vmem:[%s224_s14] sm:$0xff] %v632_v44 }
 0x234   : > { %635 = vst [vmem:[%s224_s14 + $0x8] sm:$0xff] %v633_v14 }
 0x235 PF: > { %s15_s18 = sadd.s32 1, %s756_s18  }
 0x236   : > { %p12_p4 = scmp.ge.s32.totalorder %s15_s18, 4  }
 0x238   :  { %14 = sbr.rel (!%p12_p4) target bundleno = 1 (0x1), region = 70 }

</bundles_post_ra>
